<compile_context>
chip_gen: v5e
topology: v5e:2x2
jax: 0.10.0
libtpu: 0.0.40
codegen_flags: <defaults>
</compile_context>

<pallas_src>
import numpy as np
import jax
import jax.numpy as jnp
from jax import lax
from jax.experimental import pallas as pl
from jax.experimental.pallas import tpu as pltpu

# ----------------------------- problem sizes --------------------------------
N0 = 8             # batch of inputs[0] (source domain)
N1 = 8             # batch of inputs[1] (target domain)
BATCH = N0 + N1
INPUT_DIM = 32
WIDTH = 168        # hidden width of feature_extractor (module default)
WPAD = 256         # WIDTH zero-padded up to a 128-multiple (lane-dense slab)
BOTTLENECK = 32    # bottleneck_width (module default)
NUM_SHARED = 2     # num_shared_classes
TEMP = 0.07
BASE_TEMP = 0.07
INV_TEMP = 1.0 / TEMP

# ------------------------- parameter-slab layout -----------------------------
# Single dense slab P : [P_ROWS, WPAD] f32
#   rows  0..31 : cols 0:168 = W1            cols 192:224 = Wd1
#   row     32  : cols 0:168 = b1            cols 192:224 = bd1   cols 224:256 = b2
#   row     33  : cols 0:32  = wd_diff (wd2[:,1]-wd2[:,0])   col 32 = bd_diff
#   rows 40..71 : cols 0:168 = W2^T          cols 168:256 = 0 (kills garbage
#                                            H columns produced by the stuffed
#                                            lanes of the W1 rows)
R_W1 = 0
R_B1 = 32
R_AUX = 33
R_W2T = 40
C_WD1 = 192
C_BD1 = 192
C_B2 = 224
P_ROWS = 72
P_LANES = WPAD


# ------------------------------- kernel -------------------------------------
def outer_adapter_kernel(lab_ref, x_ref, p_ref, loss_ref):
    f32 = jnp.float32
    B = BATCH

    # ---- masks built in-kernel from SMEM labels (no mask DMA, no wrapper ops)
    rows = lax.broadcasted_iota(jnp.int32, (B, B), 0)
    cols = lax.broadcasted_iota(jnp.int32, (B, B), 1)
    lab_r = jnp.zeros((B, B), jnp.int32)          # lab_r[i,j] = label[i]
    lab_c = jnp.zeros((B, B), jnp.int32)          # lab_c[i,j] = label[j]
    for i in range(B):                            # static unroll, B = 16
        li = lab_ref[i]
        lab_r = jnp.where(rows == i, li, lab_r)
        lab_c = jnp.where(cols == i, li, lab_c)
    logits_mask = (rows != cols).astype(f32)                       # 1 - eye
    pos_mask = ((lab_r == lab_c) & (rows != cols)).astype(f32)     # same label, no self

    row1 = lax.broadcasted_iota(jnp.int32, (B, 1), 0)
    is_src = row1 < N0
    s = jnp.where(is_src, 1.0, -1.0)                               # [B,1] CE sign
    lab_col = lab_r[:, 0:1]                                        # label per row
    w = jnp.where(is_src, 1.0, (lab_col <= NUM_SHARED).astype(f32))  # [B,1] CE weight

    # ---- feature extractor on the full concatenated batch (f32, MXU) ----
    X = x_ref[...]                                                 # [B, 32]
    W1 = p_ref[R_W1:R_W1 + INPUT_DIM, :]                           # [32, 256]
    b1 = p_ref[R_B1:R_B1 + 1, :]                                   # [1, 256]
    H = jnp.maximum(jnp.dot(X, W1, preferred_element_type=f32) + b1, 0.0)
    # (columns >= 168 of H hold garbage from the stuffed Wd1/bd1/b2 lanes;
    #  they are multiplied by the exact zeros in W2T below.)

    W2T = p_ref[R_W2T:R_W2T + BOTTLENECK, :]                       # [32, 256]
    F = lax.dot_general(H, W2T, dimension_numbers=(((1,), (1,)), ((), ())),
                        preferred_element_type=f32)                # [B, 32]
    b2 = p_ref[R_B1:R_B1 + 1, C_B2:C_B2 + BOTTLENECK]              # [1, 32]
    F = jnp.maximum(F + b2, 0.0)

    # ---- discriminator (gradient reversal is identity in forward) ----
    Wd1 = p_ref[R_W1:R_W1 + BOTTLENECK, C_WD1:C_WD1 + BOTTLENECK]  # [32, 32]
    bd1 = p_ref[R_B1:R_B1 + 1, C_BD1:C_BD1 + BOTTLENECK]           # [1, 32]
    Hd = jnp.maximum(jnp.dot(F, Wd1, preferred_element_type=f32) + bd1, 0.0)

    # 2-class head folded into a margin vector -> VPU lane reduction, no MXU.
    wdd = p_ref[R_AUX:R_AUX + 1, 0:BOTTLENECK]                     # [1, 32]
    bdd = p_ref[R_AUX:R_AUX + 1, BOTTLENECK:BOTTLENECK + 1]        # [1, 1]
    margin = jnp.sum(Hd * wdd, axis=-1, keepdims=True) + bdd       # d1 - d0, [B,1]

    # ---- 2-class cross-entropy as softplus of the logit margin ----
    diff = s * margin
    ce = jnp.maximum(diff, 0.0) + jnp.log1p(jnp.exp(-jnp.abs(diff)))
    dom_num = jnp.sum(w * ce, axis=0, keepdims=True)
    dom_den = jnp.sum(w, axis=0, keepdims=True)                    # >= N0 > 0
    domain_loss = dom_num / dom_den                                # exact divide

    # ---- SupConLoss (n_views = 1, contrast_mode='all') ----
    sumsq = jnp.sum(F * F, axis=-1, keepdims=True)
    fn = F * lax.rsqrt(jnp.maximum(sumsq, 1e-24))
    sim = lax.dot_general(fn, fn, dimension_numbers=(((1,), (1,)), ((), ())),
                          preferred_element_type=f32) * INV_TEMP   # [B, B]
    logits = sim - jnp.max(sim, axis=-1, keepdims=True)
    exp_logits = jnp.exp(logits) * logits_mask
    log_prob = logits - jnp.log(jnp.sum(exp_logits, axis=-1, keepdims=True))
    # NaN guard: rows with zero positives contribute 0 (reference would be NaN)
    pos_cnt = jnp.maximum(jnp.sum(pos_mask, axis=-1, keepdims=True), 1.0)
    mean_log_prob_pos = (jnp.sum(pos_mask * log_prob, axis=-1, keepdims=True)
                         / pos_cnt)                                # [B, 1]
    cl_loss = jnp.sum(-(TEMP / BASE_TEMP) * mean_log_prob_pos,
                      axis=0, keepdims=True) * (1.0 / B)           # [1, 1]

    loss_ref[...] = 0.5 * domain_loss + cl_loss


# ------------------------------- wrapper -------------------------------------
def pack_params(params):
    """Pack the 8 Linear parameters into ONE dense f32 slab (host-side, once)."""
    P = np.zeros((P_ROWS, P_LANES), np.float32)
    w1 = np.asarray(params["w1"], np.float32)
    b1 = np.asarray(params["b1"], np.float32).reshape(-1)
    w2 = np.asarray(params["w2"], np.float32)
    b2 = np.asarray(params["b2"], np.float32).reshape(-1)
    wd1 = np.asarray(params["wd1"], np.float32)
    bd1 = np.asarray(params["bd1"], np.float32).reshape(-1)
    wd2 = np.asarray(params["wd2"], np.float32)
    bd2 = np.asarray(params["bd2"], np.float32).reshape(-1)

    P[R_W1:R_W1 + INPUT_DIM, 0:WIDTH] = w1
    P[R_W1:R_W1 + BOTTLENECK, C_WD1:C_WD1 + BOTTLENECK] = wd1
    P[R_B1, 0:WIDTH] = b1
    P[R_B1, C_BD1:C_BD1 + BOTTLENECK] = bd1
    P[R_B1, C_B2:C_B2 + BOTTLENECK] = b2
    P[R_AUX, 0:BOTTLENECK] = wd2[:, 1] - wd2[:, 0]
    P[R_AUX, BOTTLENECK] = bd2[1] - bd2[0]
    P[R_W2T:R_W2T + BOTTLENECK, 0:WIDTH] = w2.T
    return jnp.asarray(P)


@jax.jit
def outer_adapter_loss(x0, x1, y0, y1, pslab):
    # Wrapper is just two concatenates; everything else happens in-kernel.
    X = jnp.concatenate([x0, x1], axis=0)                          # [B, INPUT_DIM]
    labels = jnp.concatenate([y0, y1], axis=0).astype(jnp.int32)   # [B]

    smem = pl.BlockSpec(memory_space=pltpu.MemorySpace.SMEM)
    vmem = pl.BlockSpec(memory_space=pltpu.MemorySpace.VMEM)
    out = pl.pallas_call(
        outer_adapter_kernel,
        out_shape=jax.ShapeDtypeStruct((1, 1), jnp.float32),
        in_specs=[smem, vmem, vmem],
        out_specs=vmem,
    )(labels, X, pslab)
    return out[0, 0]


# ---------------------------- numpy reference --------------------------------
def reference_loss(x0, x1, y0, y1, p):
    x0, x1, y0, y1 = map(np.asarray, (x0, x1, y0, y1))
    W1, b1, W2, b2 = (np.asarray(p[k]) for k in ("w1", "b1", "w2", "b2"))
    Wd1, bd1, Wd2, bd2 = (np.asarray(p[k]) for k in ("wd1", "bd1", "wd2", "bd2"))

    def feat(x):
        h = np.maximum(x @ W1 + b1, 0.0)
        return np.maximum(h @ W2 + b2, 0.0)

    f0, f1 = feat(x0), feat(x1)
    tidx = y1 <= NUM_SHARED
    dom_in = np.concatenate([f0, f1[tidx]], axis=0)
    h = np.maximum(dom_in @ Wd1 + bd1, 0.0)
    logits = h @ Wd2 + bd2
    labels = np.array([0] * f0.shape[0] + [1] * int(tidx.sum()))
    m = logits.max(-1, keepdims=True)
    lse = m[:, 0] + np.log(np.exp(logits - m).sum(-1))
    domain_loss = (lse - logits[np.arange(len(labels)), labels]).mean()

    comb = np.concatenate([f0, f1], axis=0)
    fn = comb / np.maximum(np.linalg.norm(comb, axis=-1, keepdims=True), 1e-12)
    lab = np.concatenate([y0, y1])
    B = fn.shape[0]
    sim = fn @ fn.T / TEMP
    lg = sim - sim.max(-1, keepdims=True)
    lm = 1.0 - np.eye(B)
    pm = (lab[:, None] == lab[None, :]).astype(np.float32) * lm
    exp_l = np.exp(lg) * lm
    log_prob = lg - np.log(exp_l.sum(-1, keepdims=True))
    mlpp = (pm * log_prob).sum(-1) / pm.sum(-1)
    cl_loss = (-(TEMP / BASE_TEMP) * mlpp).mean()
    return 0.5 * domain_loss + cl_loss


# --------------------------------- main ---------------------------------------
if __name__ == "__main__":
    key = jax.random.PRNGKey(0)
    ks = jax.random.split(key, 10)

    x0 = jax.random.normal(ks[0], (N0, INPUT_DIM), jnp.float32)
    x1 = jax.random.normal(ks[1], (N1, INPUT_DIM), jnp.float32)
    # labels with guaranteed positives (for SupCon) and a nontrivial shared-class mask
    y0 = jnp.arange(N0, dtype=jnp.int32) % 4
    y1 = (jnp.arange(N1, dtype=jnp.int32) + 1) % 4

    def lin(kw, kb, fan_in, fan_out):
        wgt = jax.random.normal(kw, (fan_in, fan_out), jnp.float32) * 0.1
        bia = jax.random.normal(kb, (1, fan_out), jnp.float32) * 0.1
        return wgt, bia

    w1, b1 = lin(ks[2], ks[3], INPUT_DIM, WIDTH)
    w2, b2 = lin(ks[4], ks[5], WIDTH, BOTTLENECK)
    wd1, bd1 = lin(ks[6], ks[7], BOTTLENECK, BOTTLENECK)
    wd2, bd2 = lin(ks[8], ks[9], BOTTLENECK, 2)
    params = dict(w1=w1, b1=b1, w2=w2, b2=b2, wd1=wd1, bd1=bd1, wd2=wd2, bd2=bd2)

    # Pack parameters ONCE outside the per-call step.
    pslab = pack_params(params)

    loss = outer_adapter_loss(x0, x1, y0, y1, pslab)
    jax.block_until_ready(loss)

    ref = reference_loss(x0, x1, y0, y1, params)
    assert np.allclose(np.asarray(loss), ref, rtol=2e-3, atol=2e-3), (loss, ref)

    print("KERNEL_OK")
</pallas_src>

<mosaic_0001>
module attributes {stable_mosaic.version = 11 : i64} {
  func.func @outer_adapter_kernel(%arg0: memref<16xi32, #tpu.memory_space<smem>>, %arg1: memref<16x32xf32, #tpu.memory_space<vmem>>, %arg2: memref<72x256xf32, #tpu.memory_space<vmem>>, %arg3: memref<1x1xf32, #tpu.memory_space<vmem>>) attributes {dimension_semantics = [], scalar_prefetch = 0 : i64, scratch_operands = 0 : i64, tpu.core_type = #tpu.core_type<tc>} {
    %0 = tpu.iota {dimensions = array<i32: 0>} : vector<16x16xi32>
    %1 = tpu.iota {dimensions = array<i32: 1>} : vector<16x16xi32>
    %c0_i32 = arith.constant 0 : i32
    %2 = vector.broadcast %c0_i32 : i32 to vector<16x16xi32>
    %c0_i32_0 = arith.constant 0 : i32
    %3 = vector.broadcast %c0_i32_0 : i32 to vector<16x16xi32>
    %c0 = arith.constant 0 : index
    %4 = memref.load %arg0[%c0] : memref<16xi32, #tpu.memory_space<smem>>
    %c0_i32_1 = arith.constant 0 : i32
    %5 = vector.broadcast %c0_i32_1 : i32 to vector<16x16xi32>
    %6 = arith.cmpi eq, %0, %5 : vector<16x16xi32>
    %7 = vector.broadcast %4 : i32 to vector<16x16xi32>
    %8 = arith.select %6, %7, %2 : vector<16x16xi1>, vector<16x16xi32>
    %c0_i32_2 = arith.constant 0 : i32
    %9 = vector.broadcast %c0_i32_2 : i32 to vector<16x16xi32>
    %10 = arith.cmpi eq, %1, %9 : vector<16x16xi32>
    %11 = vector.broadcast %4 : i32 to vector<16x16xi32>
    %12 = arith.select %10, %11, %3 : vector<16x16xi1>, vector<16x16xi32>
    %c1 = arith.constant 1 : index
    %13 = memref.load %arg0[%c1] : memref<16xi32, #tpu.memory_space<smem>>
    %c1_i32 = arith.constant 1 : i32
    %14 = vector.broadcast %c1_i32 : i32 to vector<16x16xi32>
    %15 = arith.cmpi eq, %0, %14 : vector<16x16xi32>
    %16 = vector.broadcast %13 : i32 to vector<16x16xi32>
    %17 = arith.select %15, %16, %8 : vector<16x16xi1>, vector<16x16xi32>
    %c1_i32_3 = arith.constant 1 : i32
    %18 = vector.broadcast %c1_i32_3 : i32 to vector<16x16xi32>
    %19 = arith.cmpi eq, %1, %18 : vector<16x16xi32>
    %20 = vector.broadcast %13 : i32 to vector<16x16xi32>
    %21 = arith.select %19, %20, %12 : vector<16x16xi1>, vector<16x16xi32>
    %c2 = arith.constant 2 : index
    %22 = memref.load %arg0[%c2] : memref<16xi32, #tpu.memory_space<smem>>
    %c2_i32 = arith.constant 2 : i32
    %23 = vector.broadcast %c2_i32 : i32 to vector<16x16xi32>
    %24 = arith.cmpi eq, %0, %23 : vector<16x16xi32>
    %25 = vector.broadcast %22 : i32 to vector<16x16xi32>
    %26 = arith.select %24, %25, %17 : vector<16x16xi1>, vector<16x16xi32>
    %c2_i32_4 = arith.constant 2 : i32
    %27 = vector.broadcast %c2_i32_4 : i32 to vector<16x16xi32>
    %28 = arith.cmpi eq, %1, %27 : vector<16x16xi32>
    %29 = vector.broadcast %22 : i32 to vector<16x16xi32>
    %30 = arith.select %28, %29, %21 : vector<16x16xi1>, vector<16x16xi32>
    %c3 = arith.constant 3 : index
    %31 = memref.load %arg0[%c3] : memref<16xi32, #tpu.memory_space<smem>>
    %c3_i32 = arith.constant 3 : i32
    %32 = vector.broadcast %c3_i32 : i32 to vector<16x16xi32>
    %33 = arith.cmpi eq, %0, %32 : vector<16x16xi32>
    %34 = vector.broadcast %31 : i32 to vector<16x16xi32>
    %35 = arith.select %33, %34, %26 : vector<16x16xi1>, vector<16x16xi32>
    %c3_i32_5 = arith.constant 3 : i32
    %36 = vector.broadcast %c3_i32_5 : i32 to vector<16x16xi32>
    %37 = arith.cmpi eq, %1, %36 : vector<16x16xi32>
    %38 = vector.broadcast %31 : i32 to vector<16x16xi32>
    %39 = arith.select %37, %38, %30 : vector<16x16xi1>, vector<16x16xi32>
    %c4 = arith.constant 4 : index
    %40 = memref.load %arg0[%c4] : memref<16xi32, #tpu.memory_space<smem>>
    %c4_i32 = arith.constant 4 : i32
    %41 = vector.broadcast %c4_i32 : i32 to vector<16x16xi32>
    %42 = arith.cmpi eq, %0, %41 : vector<16x16xi32>
    %43 = vector.broadcast %40 : i32 to vector<16x16xi32>
    %44 = arith.select %42, %43, %35 : vector<16x16xi1>, vector<16x16xi32>
    %c4_i32_6 = arith.constant 4 : i32
    %45 = vector.broadcast %c4_i32_6 : i32 to vector<16x16xi32>
    %46 = arith.cmpi eq, %1, %45 : vector<16x16xi32>
    %47 = vector.broadcast %40 : i32 to vector<16x16xi32>
    %48 = arith.select %46, %47, %39 : vector<16x16xi1>, vector<16x16xi32>
    %c5 = arith.constant 5 : index
    %49 = memref.load %arg0[%c5] : memref<16xi32, #tpu.memory_space<smem>>
    %c5_i32 = arith.constant 5 : i32
    %50 = vector.broadcast %c5_i32 : i32 to vector<16x16xi32>
    %51 = arith.cmpi eq, %0, %50 : vector<16x16xi32>
    %52 = vector.broadcast %49 : i32 to vector<16x16xi32>
    %53 = arith.select %51, %52, %44 : vector<16x16xi1>, vector<16x16xi32>
    %c5_i32_7 = arith.constant 5 : i32
    %54 = vector.broadcast %c5_i32_7 : i32 to vector<16x16xi32>
    %55 = arith.cmpi eq, %1, %54 : vector<16x16xi32>
    %56 = vector.broadcast %49 : i32 to vector<16x16xi32>
    %57 = arith.select %55, %56, %48 : vector<16x16xi1>, vector<16x16xi32>
    %c6 = arith.constant 6 : index
    %58 = memref.load %arg0[%c6] : memref<16xi32, #tpu.memory_space<smem>>
    %c6_i32 = arith.constant 6 : i32
    %59 = vector.broadcast %c6_i32 : i32 to vector<16x16xi32>
    %60 = arith.cmpi eq, %0, %59 : vector<16x16xi32>
    %61 = vector.broadcast %58 : i32 to vector<16x16xi32>
    %62 = arith.select %60, %61, %53 : vector<16x16xi1>, vector<16x16xi32>
    %c6_i32_8 = arith.constant 6 : i32
    %63 = vector.broadcast %c6_i32_8 : i32 to vector<16x16xi32>
    %64 = arith.cmpi eq, %1, %63 : vector<16x16xi32>
    %65 = vector.broadcast %58 : i32 to vector<16x16xi32>
    %66 = arith.select %64, %65, %57 : vector<16x16xi1>, vector<16x16xi32>
    %c7 = arith.constant 7 : index
    %67 = memref.load %arg0[%c7] : memref<16xi32, #tpu.memory_space<smem>>
    %c7_i32 = arith.constant 7 : i32
    %68 = vector.broadcast %c7_i32 : i32 to vector<16x16xi32>
    %69 = arith.cmpi eq, %0, %68 : vector<16x16xi32>
    %70 = vector.broadcast %67 : i32 to vector<16x16xi32>
    %71 = arith.select %69, %70, %62 : vector<16x16xi1>, vector<16x16xi32>
    %c7_i32_9 = arith.constant 7 : i32
    %72 = vector.broadcast %c7_i32_9 : i32 to vector<16x16xi32>
    %73 = arith.cmpi eq, %1, %72 : vector<16x16xi32>
    %74 = vector.broadcast %67 : i32 to vector<16x16xi32>
    %75 = arith.select %73, %74, %66 : vector<16x16xi1>, vector<16x16xi32>
    %c8 = arith.constant 8 : index
    %76 = memref.load %arg0[%c8] : memref<16xi32, #tpu.memory_space<smem>>
    %c8_i32 = arith.constant 8 : i32
    %77 = vector.broadcast %c8_i32 : i32 to vector<16x16xi32>
    %78 = arith.cmpi eq, %0, %77 : vector<16x16xi32>
    %79 = vector.broadcast %76 : i32 to vector<16x16xi32>
    %80 = arith.select %78, %79, %71 : vector<16x16xi1>, vector<16x16xi32>
    %c8_i32_10 = arith.constant 8 : i32
    %81 = vector.broadcast %c8_i32_10 : i32 to vector<16x16xi32>
    %82 = arith.cmpi eq, %1, %81 : vector<16x16xi32>
    %83 = vector.broadcast %76 : i32 to vector<16x16xi32>
    %84 = arith.select %82, %83, %75 : vector<16x16xi1>, vector<16x16xi32>
    %c9 = arith.constant 9 : index
    %85 = memref.load %arg0[%c9] : memref<16xi32, #tpu.memory_space<smem>>
    %c9_i32 = arith.constant 9 : i32
    %86 = vector.broadcast %c9_i32 : i32 to vector<16x16xi32>
    %87 = arith.cmpi eq, %0, %86 : vector<16x16xi32>
    %88 = vector.broadcast %85 : i32 to vector<16x16xi32>
    %89 = arith.select %87, %88, %80 : vector<16x16xi1>, vector<16x16xi32>
    %c9_i32_11 = arith.constant 9 : i32
    %90 = vector.broadcast %c9_i32_11 : i32 to vector<16x16xi32>
    %91 = arith.cmpi eq, %1, %90 : vector<16x16xi32>
    %92 = vector.broadcast %85 : i32 to vector<16x16xi32>
    %93 = arith.select %91, %92, %84 : vector<16x16xi1>, vector<16x16xi32>
    %c10 = arith.constant 10 : index
    %94 = memref.load %arg0[%c10] : memref<16xi32, #tpu.memory_space<smem>>
    %c10_i32 = arith.constant 10 : i32
    %95 = vector.broadcast %c10_i32 : i32 to vector<16x16xi32>
    %96 = arith.cmpi eq, %0, %95 : vector<16x16xi32>
    %97 = vector.broadcast %94 : i32 to vector<16x16xi32>
    %98 = arith.select %96, %97, %89 : vector<16x16xi1>, vector<16x16xi32>
    %c10_i32_12 = arith.constant 10 : i32
    %99 = vector.broadcast %c10_i32_12 : i32 to vector<16x16xi32>
    %100 = arith.cmpi eq, %1, %99 : vector<16x16xi32>
    %101 = vector.broadcast %94 : i32 to vector<16x16xi32>
    %102 = arith.select %100, %101, %93 : vector<16x16xi1>, vector<16x16xi32>
    %c11 = arith.constant 11 : index
    %103 = memref.load %arg0[%c11] : memref<16xi32, #tpu.memory_space<smem>>
    %c11_i32 = arith.constant 11 : i32
    %104 = vector.broadcast %c11_i32 : i32 to vector<16x16xi32>
    %105 = arith.cmpi eq, %0, %104 : vector<16x16xi32>
    %106 = vector.broadcast %103 : i32 to vector<16x16xi32>
    %107 = arith.select %105, %106, %98 : vector<16x16xi1>, vector<16x16xi32>
    %c11_i32_13 = arith.constant 11 : i32
    %108 = vector.broadcast %c11_i32_13 : i32 to vector<16x16xi32>
    %109 = arith.cmpi eq, %1, %108 : vector<16x16xi32>
    %110 = vector.broadcast %103 : i32 to vector<16x16xi32>
    %111 = arith.select %109, %110, %102 : vector<16x16xi1>, vector<16x16xi32>
    %c12 = arith.constant 12 : index
    %112 = memref.load %arg0[%c12] : memref<16xi32, #tpu.memory_space<smem>>
    %c12_i32 = arith.constant 12 : i32
    %113 = vector.broadcast %c12_i32 : i32 to vector<16x16xi32>
    %114 = arith.cmpi eq, %0, %113 : vector<16x16xi32>
    %115 = vector.broadcast %112 : i32 to vector<16x16xi32>
    %116 = arith.select %114, %115, %107 : vector<16x16xi1>, vector<16x16xi32>
    %c12_i32_14 = arith.constant 12 : i32
    %117 = vector.broadcast %c12_i32_14 : i32 to vector<16x16xi32>
    %118 = arith.cmpi eq, %1, %117 : vector<16x16xi32>
    %119 = vector.broadcast %112 : i32 to vector<16x16xi32>
    %120 = arith.select %118, %119, %111 : vector<16x16xi1>, vector<16x16xi32>
    %c13 = arith.constant 13 : index
    %121 = memref.load %arg0[%c13] : memref<16xi32, #tpu.memory_space<smem>>
    %c13_i32 = arith.constant 13 : i32
    %122 = vector.broadcast %c13_i32 : i32 to vector<16x16xi32>
    %123 = arith.cmpi eq, %0, %122 : vector<16x16xi32>
    %124 = vector.broadcast %121 : i32 to vector<16x16xi32>
    %125 = arith.select %123, %124, %116 : vector<16x16xi1>, vector<16x16xi32>
    %c13_i32_15 = arith.constant 13 : i32
    %126 = vector.broadcast %c13_i32_15 : i32 to vector<16x16xi32>
    %127 = arith.cmpi eq, %1, %126 : vector<16x16xi32>
    %128 = vector.broadcast %121 : i32 to vector<16x16xi32>
    %129 = arith.select %127, %128, %120 : vector<16x16xi1>, vector<16x16xi32>
    %c14 = arith.constant 14 : index
    %130 = memref.load %arg0[%c14] : memref<16xi32, #tpu.memory_space<smem>>
    %c14_i32 = arith.constant 14 : i32
    %131 = vector.broadcast %c14_i32 : i32 to vector<16x16xi32>
    %132 = arith.cmpi eq, %0, %131 : vector<16x16xi32>
    %133 = vector.broadcast %130 : i32 to vector<16x16xi32>
    %134 = arith.select %132, %133, %125 : vector<16x16xi1>, vector<16x16xi32>
    %c14_i32_16 = arith.constant 14 : i32
    %135 = vector.broadcast %c14_i32_16 : i32 to vector<16x16xi32>
    %136 = arith.cmpi eq, %1, %135 : vector<16x16xi32>
    %137 = vector.broadcast %130 : i32 to vector<16x16xi32>
    %138 = arith.select %136, %137, %129 : vector<16x16xi1>, vector<16x16xi32>
    %c15 = arith.constant 15 : index
    %139 = memref.load %arg0[%c15] : memref<16xi32, #tpu.memory_space<smem>>
    %c15_i32 = arith.constant 15 : i32
    %140 = vector.broadcast %c15_i32 : i32 to vector<16x16xi32>
    %141 = arith.cmpi eq, %0, %140 : vector<16x16xi32>
    %142 = vector.broadcast %139 : i32 to vector<16x16xi32>
    %143 = arith.select %141, %142, %134 : vector<16x16xi1>, vector<16x16xi32>
    %c15_i32_17 = arith.constant 15 : i32
    %144 = vector.broadcast %c15_i32_17 : i32 to vector<16x16xi32>
    %145 = arith.cmpi eq, %1, %144 : vector<16x16xi32>
    %146 = vector.broadcast %139 : i32 to vector<16x16xi32>
    %147 = arith.select %145, %146, %138 : vector<16x16xi1>, vector<16x16xi32>
    %148 = arith.cmpi ne, %0, %1 : vector<16x16xi32>
    %149 = arith.extui %148 : vector<16x16xi1> to vector<16x16xi32>
    %150 = arith.sitofp %149 : vector<16x16xi32> to vector<16x16xf32>
    %151 = arith.cmpi eq, %143, %147 : vector<16x16xi32>
    %152 = arith.cmpi ne, %0, %1 : vector<16x16xi32>
    %153 = arith.andi %151, %152 : vector<16x16xi1>
    %154 = arith.extui %153 : vector<16x16xi1> to vector<16x16xi32>
    %155 = arith.sitofp %154 : vector<16x16xi32> to vector<16x16xf32>
    %156 = tpu.iota {dimensions = array<i32: 0>} : vector<16x1xi32>
    %c8_i32_18 = arith.constant 8 : i32
    %157 = vector.broadcast %c8_i32_18 : i32 to vector<16x1xi32>
    %158 = arith.cmpi slt, %156, %157 : vector<16x1xi32>
    %cst = arith.constant 1.000000e+00 : f32
    %cst_19 = arith.constant -1.000000e+00 : f32
    %159 = vector.broadcast %cst : f32 to vector<16x1xf32>
    %160 = vector.broadcast %cst_19 : f32 to vector<16x1xf32>
    %161 = arith.select %158, %159, %160 : vector<16x1xi1>, vector<16x1xf32>
    %162 = vector.extract_strided_slice %143 {offsets = [0, 0], sizes = [16, 1], strides = [1, 1]} : vector<16x16xi32> to vector<16x1xi32>
    %c2_i32_20 = arith.constant 2 : i32
    %163 = vector.broadcast %c2_i32_20 : i32 to vector<16x1xi32>
    %164 = arith.cmpi sle, %162, %163 : vector<16x1xi32>
    %165 = arith.extui %164 : vector<16x1xi1> to vector<16x1xi32>
    %166 = arith.sitofp %165 : vector<16x1xi32> to vector<16x1xf32>
    %cst_21 = arith.constant 1.000000e+00 : f32
    %167 = vector.broadcast %cst_21 : f32 to vector<16x1xf32>
    %168 = arith.select %158, %167, %166 : vector<16x1xi1>, vector<16x1xf32>
    %c0_22 = arith.constant 0 : index
    %c0_23 = arith.constant 0 : index
    %169 = vector.load %arg1[%c0_22, %c0_23] : memref<16x32xf32, #tpu.memory_space<vmem>>, vector<16x32xf32>
    %c0_24 = arith.constant 0 : index
    %c0_25 = arith.constant 0 : index
    %170 = vector.load %arg2[%c0_24, %c0_25] : memref<72x256xf32, #tpu.memory_space<vmem>>, vector<32x256xf32>
    %c32 = arith.constant 32 : index
    %c0_26 = arith.constant 0 : index
    %171 = vector.load %arg2[%c32, %c0_26] : memref<72x256xf32, #tpu.memory_space<vmem>>, vector<1x256xf32>
    %cst_27 = arith.constant dense<0.000000e+00> : vector<16x256xf32>
    %172 = tpu.matmul %169, %170, %cst_27 {dimension_numbers = #tpu.dot_dimension_numbers<[1], [0], [0], [1], [0, 0, 1, 1], [], []>} : vector<16x32xf32>, vector<32x256xf32>, vector<16x256xf32> -> vector<16x256xf32>
    %173 = vector.broadcast %171 : vector<1x256xf32> to vector<16x256xf32>
    %174 = arith.addf %172, %173 : vector<16x256xf32>
    %cst_28 = arith.constant 0.000000e+00 : f32
    %175 = vector.broadcast %cst_28 : f32 to vector<16x256xf32>
    %176 = arith.maximumf %174, %175 : vector<16x256xf32>
    %c40 = arith.constant 40 : index
    %c0_29 = arith.constant 0 : index
    %177 = vector.load %arg2[%c40, %c0_29] : memref<72x256xf32, #tpu.memory_space<vmem>>, vector<32x256xf32>
    %cst_30 = arith.constant dense<0.000000e+00> : vector<16x32xf32>
    %178 = tpu.matmul %176, %177, %cst_30 {dimension_numbers = #tpu.dot_dimension_numbers<[1], [1], [0], [0], [0, 0, 1, 0], [], []>} : vector<16x256xf32>, vector<32x256xf32>, vector<16x32xf32> -> vector<16x32xf32>
    %c32_31 = arith.constant 32 : index
    %c224 = arith.constant 224 : index
    %179 = vector.load %arg2[%c32_31, %c224] : memref<72x256xf32, #tpu.memory_space<vmem>>, vector<1x32xf32>
    %180 = vector.broadcast %179 : vector<1x32xf32> to vector<16x32xf32>
    %181 = arith.addf %178, %180 : vector<16x32xf32>
    %cst_32 = arith.constant 0.000000e+00 : f32
    %182 = vector.broadcast %cst_32 : f32 to vector<16x32xf32>
    %183 = arith.maximumf %181, %182 : vector<16x32xf32>
    %c0_33 = arith.constant 0 : index
    %c192 = arith.constant 192 : index
    %184 = vector.load %arg2[%c0_33, %c192] : memref<72x256xf32, #tpu.memory_space<vmem>>, vector<32x32xf32>
    %c32_34 = arith.constant 32 : index
    %c192_35 = arith.constant 192 : index
    %185 = vector.load %arg2[%c32_34, %c192_35] : memref<72x256xf32, #tpu.memory_space<vmem>>, vector<1x32xf32>
    %cst_36 = arith.constant dense<0.000000e+00> : vector<16x32xf32>
    %186 = tpu.matmul %183, %184, %cst_36 {dimension_numbers = #tpu.dot_dimension_numbers<[1], [0], [0], [1], [0, 0, 1, 1], [], []>} : vector<16x32xf32>, vector<32x32xf32>, vector<16x32xf32> -> vector<16x32xf32>
    %187 = vector.broadcast %185 : vector<1x32xf32> to vector<16x32xf32>
    %188 = arith.addf %186, %187 : vector<16x32xf32>
    %cst_37 = arith.constant 0.000000e+00 : f32
    %189 = vector.broadcast %cst_37 : f32 to vector<16x32xf32>
    %190 = arith.maximumf %188, %189 : vector<16x32xf32>
    %c33 = arith.constant 33 : index
    %c0_38 = arith.constant 0 : index
    %191 = vector.load %arg2[%c33, %c0_38] : memref<72x256xf32, #tpu.memory_space<vmem>>, vector<1x32xf32>
    %c33_39 = arith.constant 33 : index
    %c32_40 = arith.constant 32 : index
    %192 = vector.load %arg2[%c33_39, %c32_40] : memref<72x256xf32, #tpu.memory_space<vmem>>, vector<1x1xf32>
    %193 = vector.broadcast %191 : vector<1x32xf32> to vector<16x32xf32>
    %194 = arith.mulf %190, %193 : vector<16x32xf32>
    %cst_41 = arith.constant dense<0.000000e+00> : vector<16xf32>
    %195 = vector.multi_reduction <add>, %194, %cst_41 [1] : vector<16x32xf32> to vector<16xf32>
    %196 = vector.shape_cast %195 : vector<16xf32> to vector<16x1xf32>
    %197 = vector.broadcast %192 : vector<1x1xf32> to vector<16x1xf32>
    %198 = arith.addf %196, %197 : vector<16x1xf32>
    %199 = arith.mulf %161, %198 : vector<16x1xf32>
    %cst_42 = arith.constant 0.000000e+00 : f32
    %200 = vector.broadcast %cst_42 : f32 to vector<16x1xf32>
    %201 = arith.maximumf %199, %200 : vector<16x1xf32>
    %202 = math.absf %199 : vector<16x1xf32>
    %cst_43 = arith.constant 0.000000e+00 : f32
    %203 = vector.broadcast %cst_43 : f32 to vector<16x1xf32>
    %204 = arith.subf %203, %202 : vector<16x1xf32>
    %205 = math.exp %204 : vector<16x1xf32>
    %206 = math.log1p %205 : vector<16x1xf32>
    %207 = arith.addf %201, %206 : vector<16x1xf32>
    %208 = arith.mulf %168, %207 : vector<16x1xf32>
    %cst_44 = arith.constant dense<0.000000e+00> : vector<1xf32>
    %209 = vector.multi_reduction <add>, %208, %cst_44 [0] : vector<16x1xf32> to vector<1xf32>
    %210 = vector.shape_cast %209 : vector<1xf32> to vector<1x1xf32>
    %cst_45 = arith.constant dense<0.000000e+00> : vector<1xf32>
    %211 = vector.multi_reduction <add>, %168, %cst_45 [0] : vector<16x1xf32> to vector<1xf32>
    %212 = vector.shape_cast %211 : vector<1xf32> to vector<1x1xf32>
    %213 = arith.divf %210, %212 : vector<1x1xf32>
    %214 = arith.mulf %183, %183 : vector<16x32xf32>
    %cst_46 = arith.constant dense<0.000000e+00> : vector<16xf32>
    %215 = vector.multi_reduction <add>, %214, %cst_46 [1] : vector<16x32xf32> to vector<16xf32>
    %216 = vector.shape_cast %215 : vector<16xf32> to vector<16x1xf32>
    %cst_47 = arith.constant 1.000000e-24 : f32
    %217 = vector.broadcast %cst_47 : f32 to vector<16x1xf32>
    %218 = arith.maximumf %216, %217 : vector<16x1xf32>
    %219 = math.rsqrt %218 : vector<16x1xf32>
    %220 = vector.broadcast %219 : vector<16x1xf32> to vector<16x32xf32>
    %221 = arith.mulf %183, %220 : vector<16x32xf32>
    %cst_48 = arith.constant dense<0.000000e+00> : vector<16x16xf32>
    %222 = tpu.matmul %221, %221, %cst_48 {dimension_numbers = #tpu.dot_dimension_numbers<[1], [1], [0], [0], [0, 0, 1, 0], [], []>} : vector<16x32xf32>, vector<16x32xf32>, vector<16x16xf32> -> vector<16x16xf32>
    %cst_49 = arith.constant 14.2857141 : f32
    %223 = vector.broadcast %cst_49 : f32 to vector<16x16xf32>
    %224 = arith.mulf %222, %223 : vector<16x16xf32>
    %cst_50 = arith.constant dense<0xFF800000> : vector<16xf32>
    %225 = vector.multi_reduction <maximumf>, %224, %cst_50 [1] : vector<16x16xf32> to vector<16xf32>
    %226 = vector.shape_cast %225 : vector<16xf32> to vector<16x1xf32>
    %227 = vector.broadcast %226 : vector<16x1xf32> to vector<16x16xf32>
    %228 = arith.subf %224, %227 : vector<16x16xf32>
    %229 = math.exp %228 : vector<16x16xf32>
    %230 = arith.mulf %229, %150 : vector<16x16xf32>
    %cst_51 = arith.constant dense<0.000000e+00> : vector<16xf32>
    %231 = vector.multi_reduction <add>, %230, %cst_51 [1] : vector<16x16xf32> to vector<16xf32>
    %232 = vector.shape_cast %231 : vector<16xf32> to vector<16x1xf32>
    %233 = math.log %232 : vector<16x1xf32>
    %234 = vector.broadcast %233 : vector<16x1xf32> to vector<16x16xf32>
    %235 = arith.subf %228, %234 : vector<16x16xf32>
    %cst_52 = arith.constant dense<0.000000e+00> : vector<16xf32>
    %236 = vector.multi_reduction <add>, %155, %cst_52 [1] : vector<16x16xf32> to vector<16xf32>
    %237 = vector.shape_cast %236 : vector<16xf32> to vector<16x1xf32>
    %cst_53 = arith.constant 1.000000e+00 : f32
    %238 = vector.broadcast %cst_53 : f32 to vector<16x1xf32>
    %239 = arith.maximumf %237, %238 : vector<16x1xf32>
    %240 = arith.mulf %155, %235 : vector<16x16xf32>
    %cst_54 = arith.constant dense<0.000000e+00> : vector<16xf32>
    %241 = vector.multi_reduction <add>, %240, %cst_54 [1] : vector<16x16xf32> to vector<16xf32>
    %242 = vector.shape_cast %241 : vector<16xf32> to vector<16x1xf32>
    %243 = arith.divf %242, %239 : vector<16x1xf32>
    %cst_55 = arith.constant -1.000000e+00 : f32
    %244 = vector.broadcast %cst_55 : f32 to vector<16x1xf32>
    %245 = arith.mulf %244, %243 : vector<16x1xf32>
    %cst_56 = arith.constant dense<0.000000e+00> : vector<1xf32>
    %246 = vector.multi_reduction <add>, %245, %cst_56 [0] : vector<16x1xf32> to vector<1xf32>
    %247 = vector.shape_cast %246 : vector<1xf32> to vector<1x1xf32>
    %cst_57 = arith.constant 6.250000e-02 : f32
    %248 = vector.broadcast %cst_57 : f32 to vector<1x1xf32>
    %249 = arith.mulf %247, %248 : vector<1x1xf32>
    %cst_58 = arith.constant 5.000000e-01 : f32
    %250 = vector.broadcast %cst_58 : f32 to vector<1x1xf32>
    %251 = arith.mulf %250, %213 : vector<1x1xf32>
    %252 = arith.addf %251, %249 : vector<1x1xf32>
    %c0_59 = arith.constant 0 : index
    %c0_60 = arith.constant 0 : index
    %253 = vector.load %arg3[%c0_59, %c0_60] : memref<1x1xf32, #tpu.memory_space<vmem>>, vector<1x1xf32>
    tpu.vector_store %arg3[%c0_59, %c0_60], %252 {strides = array<i32>} : memref<1x1xf32, #tpu.memory_space<vmem>>, vector<1x1xf32>,
    return
  }
}

</mosaic_0001>

<bundles_post_ra>
// kernel: outer_adapter_loss.1
= control target key start
LH: loop header
LB: loop body
LE: loop exit
PB: predicated region body
PF: predicated region fallthrough
CT: control target
= control target key end

     0   :  { %8 = vsyncpa [#allocation5], 0  ;;  %s989_s0 = inlined_call_operand.vmem [shape: s32[16], index: 0, kind: input, shape index: {}]   ;;  %s990_s1 = inlined_call_operand.vmem [shape: f32[16,32], index: 1, kind: input, shape index: {}]   ;;  %s991_s2 = inlined_call_operand.hbm [shape: f32[72,256], index: 2, kind: input, shape index: {}]   ;;  %s992_s3 = inlined_call_operand.hbm [shape: f32[1,1], index: 3, kind: output, shape index: {}]  }
   0x1   :  { %9 = vsyncpa [#allocation3], 0 }
   0x2   :  { %10 = vsyncpa [#allocation4], 0  ;;  %s16_s14 = sshll.u32 %s989_s0, 4  ;;  %s26_s17 = sshll.u32 %s991_s2, 4  ;;  %s17_s14 = int_to_ptr.vmem [resolvable:$true] %s16_s14  ;;  %s27_s17 = int_to_ptr.hbm [resolvable:$true] %s26_s17 }
   0x3   :  { %s779_s18 = smov [#allocation2]   ;;  %s780_s19 = smov [#allocation6]  }
   0x4   :  { %19 = dma.vmem_to_smem %s17_s14, 16, %s779_s18, [#allocation5]  }
   0x5   :  { %s28_s20 = sshll.u32 %s780_s19, 4  ;;  %s781_s21 = smov 256   ;;  %s29_s20 = int_to_ptr.vmem [resolvable:$true] %s28_s20 }
   0x6   :  { %s782_s22 = smov 16  }
   0x7   :  { %34 = dma.hbm_to_vmem [thread:$0]  %s27_s17, 2304, %s29_s20, [#allocation3], %s781_s21, %s781_s21, %s782_s22  }
   0x8   :  { %773 = dma.done.wait [#allocation5], 16  }
   0x9   :  { %774 = vsyncadd [#allocation5], 4294967280 }
   0xa   :  { %775 = dma.done.wait [#allocation3], 2304  }
   0xb   :  { %776 = vsyncadd [#allocation3], 4294964992 }
   0xc   :  { %43 = sfence }
   0xd   :  { %v211_v0 = vld [vmem:[#allocation6 + $0x30] sm:$0xff]  ;;  %v209_v1 = vld [vmem:[#allocation6 + $0x20] sm:$0xff]  ;;  %v814_v2 = vld [vmem:[#allocation6 + $0x38] sm:$0xff]  ;;  %vm220_vm0 = vcmask 261120   ;;  %s783_s25 = smov 32   ;;  %vm528_vm7 = vcmask 130048  }
   0xe   :  { %239 = vmatpush.msra.mxu0 %v211_v0  ;;  %262 = vmatpush.msra.mxu1 %v814_v2  ;;  %v817_v3 = vld [vmem:[#allocation6 + $0x28] sm:$0xff]  ;;  %v207_v4 = vld [vmem:[#allocation6 + $0x10] sm:$0xff]  ;;  %v208_v6 = vld [vmem:[#allocation6 + $0x18] sm:$0xff]  ;;  %s49_s26 = sld [smem:[#allocation2]]  ;;  %s786_s15 = smov 96  }
   0xf   :  { %v677_v5 = vpack.i.bf16 %v817_v3, %v814_v2  ;;  %v283_v7 = vld [vmem:[#allocation6 + $0x80] sm:$0xff]  ;;  %v284_v8 = vld [vmem:[#allocation6 + $0x88] sm:$0xff]  ;;  %v281_v12 = vld [vmem:[#allocation6 + $0x70] sm:$0xff]  ;;  %s637_s27 = sld [smem:[#allocation2 + $0x1]]  ;;  %s787_s16 = smov [#allocation7]  }
  0x10   :  { %240 = vmatpush.msra.mxu0 %v209_v1  ;;  %263 = vmatpush.msra.mxu1 %v817_v3  ;;  %v205_v9 = vld [vmem:[#allocation6] sm:$0xff]  ;;  %v206_v10 = vld [vmem:[#allocation6 + $0x8] sm:$0xff]  ;;  %v282_v13 = vld [vmem:[#allocation6 + $0x78] sm:$0xff]  ;;  %s852_s28 = sld [smem:[#allocation2 + $0x2]]  ;;  %s624_s17 = sshll.u32 %s787_s16, 4  ;;  %s625_s17 = int_to_ptr.vmem [resolvable:$true] %s624_s17 }
  0x11   :  { %302 = vmatpush.xpose.msra.mxu2 %v283_v7  ;;  %325 = vmatpush.xpose.msra.mxu3 %v284_v8  ;;  %v203_v11 = vld [vmem:[%s990_s1] sm:$0xff]  ;;  %v204_v15 = vld [vmem:[%s990_s1 + $0x8] sm:$0xff]  ;;  %v277_v17 = vld [vmem:[#allocation6 + $0x50] sm:$0xff]  ;;  %v682_v40 = vpack.i.bf16 %v206_v10, %v208_v6  ;;  %s784_s1 = smov 64   ;;  %s854_s29 = sld [smem:[#allocation2 + $0x3]] }
  0x12   :  { %241 = vmatpush.msra.mxu0 %v207_v4  ;;  %264 = vmatpush.msra.mxu1 %v208_v6  ;;  %v279_v14 = vld [vmem:[#allocation6 + $0x60] sm:$0xff]  ;;  %v280_v16 = vld [vmem:[#allocation6 + $0x68] sm:$0xff]  ;;  %v278_v18 = vld [vmem:[#allocation6 + $0x58] sm:$0xff]  ;;  %s856_s30 = sld [smem:[#allocation2 + $0x4]]  ;;  %s626_s20 = sshll.u32 %s992_s3, 4  ;;  %s627_s20 = int_to_ptr.hbm [resolvable:$true] %s626_s20 }
  0x13   :  { %v832_v19 = vld [vmem:[#allocation6 + $0x48] ss:$0 sm:$0xff]  ;;  %683 = vrot.lane.b32.xlu2 %v682_v40, %s784_s1  ;;  %s862_s4 = sld [smem:[#allocation2 + $0x5]] }
  0x14   :  { %242 = vmatpush.msra.mxu0 %v205_v9  ;;  %265 = vmatpush.msra.mxu1 %v206_v10  ;;  %v214_v20 = vld [vmem:[#allocation6 + $0x40] ss:$8 sm:$0x3]  ;;  %s867_s5 = sld [smem:[#allocation2 + $0x6]] }
  0x15   :  { %658 = vmatmul.msk.f32.vlgmr.msra.gmra.mxu0 %vm220_vm0, %v203_v11  ;;  %660 = vmatmul.msk.f32.vlgmr.msra.gmra.mxu1 %vm220_vm0, %v203_v11  ;;  %v216_v21 = vperm.slane %v214_v20, 0  ;;  %v217_v22 = vperm.slane %v214_v20, 1  ;;  %v44_v20 = vlaneseq  ;;  %s870_s6 = sld [smem:[#allocation2 + $0x7]] }
  0x16   :  { %303 = vmatpush.xpose.msra.mxu2 %v281_v12  ;;  %326 = vmatpush.xpose.msra.mxu3 %v282_v13  ;;  %s874_s7 = sld [smem:[#allocation2 + $0x8]] }
  0x17   :  { %287 = vrot.lane.b32.xlu0 %v832_v19, %s783_s25  ;;  %s880_s8 = sld [smem:[#allocation2 + $0x9]] }
  0x18   :  { %s890_s9 = sld [smem:[#allocation2 + $0xa]] }
  0x19   :  { %s896_s10 = sld [smem:[#allocation2 + $0xb]] }
  0x1a   :  { %304 = vmatpush.xpose.msra.mxu2 %v279_v14  ;;  %327 = vmatpush.xpose.msra.mxu3 %v280_v16  ;;  %s900_s11 = sld [smem:[#allocation2 + $0xc]] }
  0x1b   :  { %s904_s12 = sld [smem:[#allocation2 + $0xd]] }
  0x1c   :  { %s920_s13 = sld [smem:[#allocation2 + $0xe]] }
  0x1d   :  { %659 = vmatmul.msk.f32.gmra.mxu0 %vm220_vm0, %v204_v15  ;;  %661 = vmatmul.msk.f32.gmra.mxu1 %vm220_vm0, %v204_v15  ;;  %s929_s14 = sld [smem:[#allocation2 + $0xf]] }
  0x1e   :  { %305 = vmatpush.xpose.msra.mxu2 %v277_v17  ;;  %328 = vmatpush.xpose.msra.mxu3 %v278_v18 }
  0x6d   :  { %v684_v2 = vpop.permute.xlu2 %683 }
  0x6e   :  { %v685_v7 = vunpack.i.l.bf16 %v684_v2  ;;  %v686_v10 = vunpack.i.h.bf16 %v684_v2  ;;  %v140_v2 = vstv %s896_s10 }
  0x89   :  { %v288_v35 = vpop.permute.xlu0 %287 }
  0x92   :  { %v244_v23 = vpop.f32.mrf.mxu0  ;;  %v267_v24 = vpop.f32.mrf.mxu1 }
  0x93   :  { %v245_v25 = vadd.f32 %v244_v23, %v216_v21  ;;  %v268_v26 = vadd.f32 %v267_v24, %v217_v22  ;;  %v52_v23 = vstv %s49_s26 }
  0x95   :  { %v273_v27 = vmax.f32 %v245_v25, 0.0  ;;  %v274_v28 = vmax.f32 %v268_v26, 0.0  ;;  %v60_v26 = vstv %s637_s27 }
  0x97   :  { %306 = vmatmul.f32.vlgmr.msra.gmra.mxu2 %v273_v27  ;;  %329 = vmatmul.f32.vlgmr.msra.gmra.mxu3 %v274_v28 }
  0x9a   :  { %v247_v29 = vpop.f32.mrf.mxu0  ;;  %v270_v30 = vpop.f32.mrf.mxu1 }
  0x9b   :  { %v248_v31 = vadd.f32 %v247_v29, %v216_v21  ;;  %v271_v32 = vadd.f32 %v270_v30, %v217_v22  ;;  %v858_v21 = vshrl.u32 %v44_v20, 7  ;;  %v860_v22 = vand.u32 127, %v44_v20 }
  0x9c   :  { %v68_v30 = vstv %s852_s28  ;;  %v172_v20 = vstv %s929_s14 }
  0x9d   :  { %v275_v33 = vmax.f32 %v248_v31, 0.0  ;;  %v276_v34 = vmax.f32 %v271_v32, 0.0  ;;  %vm50_vm8 = vcmp.eq.s32.totalorder %v858_v21, 0  ;;  %vm55_vm9 = vcmp.eq.s32.totalorder %v860_v22, 0 }
  0x9e   :  { %vm58_vm10 = vcmp.eq.s32.totalorder %v858_v21, 1  ;;  %v53_v24 = vsel %vm50_vm8, %v52_v23, 0  ;;  %v56_v25 = vsel %vm55_vm9, %v52_v23, 0  ;;  %vm63_vm11 = vcmp.eq.s32.totalorder %v860_v22, 1 }
  0x9f   :  { %309 = vmatmul.f32.gmra.mxu2 %v275_v33  ;;  %332 = vmatmul.f32.gmra.mxu3 %v276_v34  ;;  %v61_v28 = vsel %vm58_vm10, %v60_v26, %v53_v24  ;;  %v64_v29 = vsel %vm63_vm11, %v60_v26, %v56_v25  ;;  %vm66_vm12 = vcmp.eq.s32.totalorder %v858_v21, 2  ;;  %vm71_vm13 = vcmp.eq.s32.totalorder %v860_v22, 2 }
  0xa0   :  { %v76_v31 = vstv %s854_s29  ;;  %v72_v33 = vsel %vm71_vm13, %v68_v30, %v64_v29  ;;  %vm79_vm14 = vcmp.eq.s32.totalorder %v860_v22, 3  ;;  %vm177_vm15 = vcmp.ne.s32.totalorder %v858_v21, %v860_v22 }
  0xa1   :  { %v887_v34 = vadd.s32 8, %v858_v21  ;;  %vm111_vm8 = vcmp.eq.s32.totalorder %v860_v22, 7  ;;  %vm119_vm9 = vcmp.eq.s32.totalorder %v860_v22, 8  ;;  %vm127_vm10 = vcmp.eq.s32.totalorder %v860_v22, 9 }
  0xa2   :  { %vm90_vm11 = vcmp.eq.s32.totalorder %v858_v21, 5  ;;  %vm143_vm13 = vcmp.eq.s32.totalorder %v860_v22, 11 }
 0x11a   :  { %v307_v36 = vpop.f32.mrf.mxu2  ;;  %v330_v37 = vpop.f32.mrf.mxu3 }
 0x11b   :  { %v308_v38 = vadd.f32 %v307_v36, %v288_v35  ;;  %v84_v36 = vstv %s856_s30 }
 0x11d   :  { %v331_v39 = vadd.f32 %v330_v37, %v308_v38  ;;  %v69_v37 = vsel %vm66_vm12, %v68_v30, %v61_v28  ;;  %vm135_vm12 = vcmp.eq.s32.totalorder %v860_v22, 10 }
 0x11f   :  { %v336_v41 = vmax.f32 %v331_v39, 0.0  ;;  %v92_v39 = vstv %s862_s4 }
 0x121   :  { %v465_v42 = vmul.f32 %v336_v41, %v336_v41 }
 0x122   :  { %v310_v43 = vpop.f32.mrf.mxu2  ;;  %v333_v44 = vpop.f32.mrf.mxu3 }
 0x123   :  { %v311_v45 = vadd.f32 %v310_v43, %v288_v35  ;;  %v467_v46 = vsel %vm220_vm0, %v465_v42, 0.0  ;;  %v80_v35 = vsel %vm79_vm14, %v76_v31, %v72_v33  ;;  %v100_v42 = vstv %s867_s5 }
 0x124   :  { %468 = vadd.xlane.f32.xlu1 %v467_v46  ;;  %vm151_vm14 = vcmp.eq.s32.totalorder %v860_v22, 12 }
 0x125   :  { %v334_v47 = vadd.f32 %v333_v44, %v311_v45 }
 0x127   :  { %v337_v48 = vmax.f32 %v334_v47, 0.0  ;;  %v108_v47 = vstv %s870_s6 }
 0x129   :  { %v466_v49 = vmul.f32 %v337_v48, %v337_v48 }
 0x12b   :  { %v470_v50 = vsel %vm220_vm0, %v466_v49, 0.0 }
 0x12c   :  { %471 = vadd.xlane.f32.xlu0 %v470_v50  ;;  %v785_v50 = vmov 0.0  }
 0x13d   :  { %678 = vrot.lane.b32.xlu1 %v677_v5, %s784_s1 }
 0x197   :  { %v469_v51 = vpop.xlane.xlu1 %468 }
 0x198   :  { %v473_v52 = vmax.f32 %v469_v51, 1e-24  ;;  %v652_v51 = vsel %vm177_vm15, 1.0, %v785_v50 }
 0x19a   :  { %687 = vrsqrt.f32 %v473_v52  ;;  %vm481_vm5 = vweird.f32 %v473_v52 }
 0x19f   :  { %v472_v53 = vpop.xlane.xlu0 %471 }
 0x1a0   :  { %v688_v54 = vpop.eup %687  ;;  %v474_v55 = vmax.f32 %v472_v53, 1e-24  ;;  %v116_v53 = vstv %s874_s7 }
 0x1a1   :  { %v476_v56 = vmul.f32 %v688_v54, %v473_v52  ;;  %vm482_vm2 = vweird.f32 %v688_v54  ;;  %v914_v52 = vld [vmem:[#allocation6 + $0x41] ss:$0 sm:$0xff] }
 0x1a2   :  { %689 = vrsqrt.f32 %v474_v55  ;;  %vm491_vm3 = vweird.f32 %v474_v55  ;;  %vm483_vm6 = vmor %vm481_vm5, %vm482_vm2  ;;  %vm87_vm2 = vcmp.eq.s32.totalorder %v860_v22, 4  ;;  %vm82_vm5 = vcmp.eq.s32.totalorder %v858_v21, 4 }
 0x1a3   :  { %v477_v57 = vmul.f32 %v688_v54, %v476_v56  ;;  %v88_v38 = vsel %vm87_vm2, %v84_v36, %v80_v35  ;;  %vm98_vm2 = vcmp.eq.s32.totalorder %v858_v21, 6 }
 0x1a5   :  { %v478_v59 = vmul.f32 0.5, %v477_v57 }
 0x1a7   :  { %v479_v62 = vsub.f32 1.5, %v478_v59 }
 0x1a8   :  { %v690_v58 = vpop.eup %689 }
 0x1a9   :  { %v486_v60 = vmul.f32 %v690_v58, %v474_v55  ;;  %vm492_vm1 = vweird.f32 %v690_v58  ;;  %v480_v6 = vmul.f32 %v688_v54, %v479_v62  ;;  %v132_v62 = vstv %s890_s9 }
 0x1aa   :  { %vm493_vm4 = vmor %vm491_vm3, %vm492_vm1  ;;  %vm74_vm1 = vcmp.eq.s32.totalorder %v858_v21, 3  ;;  %vm95_vm3 = vcmp.eq.s32.totalorder %v860_v22, 5 }
 0x1ab   :  { %v487_v61 = vmul.f32 %v690_v58, %v486_v60  ;;  %v484_v11 = vsel %vm483_vm6, %v688_v54, %v480_v6  ;;  %v77_v45 = vsel %vm74_vm1, %v76_v31, %v69_v37  ;;  %vm178_vm6 = vcmp.ne.s32.totalorder %v887_v34, %v860_v22 }
 0x1ac   :  { %v495_v12 = vmul.f32 %v484_v11, %v336_v41  ;;  %v124_v54 = vstv %s880_s8  ;;  %vm159_vm1 = vcmp.eq.s32.totalorder %v860_v22, 13 }
 0x1ad   :  { %v488_v63 = vmul.f32 0.5, %v487_v61 }
 0x1af   :  { %v489_v0 = vsub.f32 1.5, %v488_v63  ;;  %v679_v1 = vpop.permute.xlu1 %678 }
 0x1b0   :  { %v680_v3 = vunpack.i.l.bf16 %v679_v1  ;;  %v681_v4 = vunpack.i.h.bf16 %v679_v1 }
 0x1b1   :  { %v490_v5 = vmul.f32 %v690_v58, %v489_v0 }
 0x1b2   :  { %375 = vmatpush.msrb.mxu0 %v680_v3 }
 0x1b3   :  { %v494_v8 = vsel %vm493_vm4, %v690_v58, %v490_v5  ;;  %vm103_vm4 = vcmp.eq.s32.totalorder %v860_v22, 6  ;;  %v85_v58 = vsel %vm82_vm5, %v84_v36, %v77_v45  ;;  %v148_v5 = vstv %s900_s11 }
 0x1b4   :  { %376 = vmatpush.msrb.mxu0 %v681_v4  ;;  %v496_v9 = vmul.f32 %v494_v8, %v337_v48  ;;  %vm175_vm5 = vcmp.eq.s32.totalorder %v860_v22, 15 }
 0x1b6   :  { %377 = vmatpush.msrb.mxu0 %v685_v7  ;;  %664 = vmatpush.xpose.msk.msrb.mxu1 %vm220_vm0, %v496_v9  ;;  %v156_v7 = vstv %s904_s12 }
 0x1b8   :  { %378 = vmatpush.msrb.mxu0 %v686_v10  ;;  %v93_v10 = vsel %vm90_vm11, %v92_v39, %v85_v58  ;;  %vm123_vm11 = vcmp.eq.s32.totalorder %v887_v34, 9 }
 0x1b9   :  { %662 = vmatmul.msk.f32.vlgmr.msrb.gmra.mxu0 %vm220_vm0, %v336_v41  ;;  %v96_v41 = vsel %vm95_vm3, %v92_v39, %v88_v38  ;;  %vm167_vm3 = vcmp.eq.s32.totalorder %v860_v22, 14 }
 0x1ba   :  { %665 = vmatpush.xpose.msk.msrb.mxu1 %vm220_vm0, %v495_v12  ;;  %v104_v46 = vsel %vm103_vm4, %v100_v42, %v96_v41  ;;  %vm106_vm4 = vcmp.eq.s32.totalorder %v858_v21, 7 }
 0x1bb   :  { %v112_v59 = vsel %vm111_vm8, %v108_v47, %v104_v46 }
 0x1bc   :  { %v120_v61 = vsel %vm119_vm9, %v116_v53, %v112_v59 }
 0x1bd   :  { %666 = vmatmul.msk.f32.vlgmr.msrb.gmra.mxu1 %vm220_vm0, %v495_v12  ;;  %v128_v0 = vsel %vm127_vm10, %v124_v54, %v120_v61  ;;  %vm115_vm10 = vcmp.eq.s32.totalorder %v887_v34, 8 }
 0x1be   :  { %v136_v4 = vsel %vm135_vm12, %v132_v62, %v128_v0  ;;  %v118_v31 = vsel %vm115_vm10, %v116_v53, 0  ;;  %vm131_vm12 = vcmp.eq.s32.totalorder %v887_v34, 10 }
 0x1bf   :  { %v144_v6 = vsel %vm143_vm13, %v140_v2, %v136_v4  ;;  %vm155_vm13 = vcmp.eq.s32.totalorder %v887_v34, 13 }
 0x1c0   :  { %v152_v11 = vsel %vm151_vm14, %v148_v5, %v144_v6  ;;  %vm163_vm14 = vcmp.eq.s32.totalorder %v887_v34, 14 }
 0x1c1   :  { %663 = vmatmul.msk.f32.gmra.mxu0 %vm220_vm0, %v337_v48 }
 0x1c5   :  { %667 = vmatmul.msk.f32.gmra.mxu1 %vm220_vm0, %v496_v9  ;;  %v653_v9 = vsel %vm178_vm6, 1.0, %v785_v50 }
 0x236   :  { %v380_v40 = vpop.f32.mrf.mxu0 }
 0x23a   :  { %v520_v13 = vpop.f32.mrf.mxu1 }
 0x23b   :  { %v526_v14 = vmul.f32 14.285714, %v520_v13  ;;  %v160_v13 = vsel %vm159_vm1, %v156_v7, %v152_v11  ;;  %vm171_vm1 = vcmp.eq.s32.totalorder %v887_v34, 15 }
 0x23d   :  { %v529_v15 = vsel %vm528_vm7, %v526_v14, -inf }
 0x23e   :  { %530 = vmax.xlane.f32.xlu2 %v529_v15  ;;  %v383_v8 = vpop.f32.mrf.mxu0 }
 0x242   :  { %v523_v16 = vpop.f32.mrf.mxu1 }
 0x243   :  { %v527_v17 = vmul.f32 14.285714, %v523_v16 }
 0x245   :  { %v532_v18 = vsel %vm528_vm7, %v527_v17, -inf }
 0x246   :  { %533 = vmax.xlane.f32.xlu1 %v532_v18 }
 0x256   :  { %354 = vrot.lane.b32.xlu2 %v832_v19, %s784_s1 }
 0x2b1   :  { %v531_v19 = vpop.xlane.xlu2 %530 }
 0x2b2   :  { %v872_v27 = vsub.f32 %v526_v14, %v531_v19  ;;  %v164_v14 = vstv %s920_s13 }
 0x2b3   :  { %v168_v18 = vsel %vm167_vm3, %v164_v14, %v160_v13 }
 0x2b4   :  { %v537_v32 = vmul.f32 1.442695, %v872_v27  ;;  %v176_v25 = vsel %vm175_vm5, %v172_v20, %v168_v18  ;;  %vm433_vm5 = vcmask 269568  }
 0x2b6   :  { %691 = vpow2.f32 %v537_v32  ;;  %v126_v32 = vsel %vm123_vm11, %v124_v54, %v118_v31 }
 0x2b7   :  { %v134_v33 = vsel %vm131_vm12, %v132_v62, %v126_v32 }
 0x2b9   :  { %v355_v43 = vpop.permute.xlu2 %354  ;;  %v534_v44 = vpop.xlane.xlu1 %533 }
 0x2ba   :  { %v381_v48 = vadd.f32 %v380_v40, %v355_v43  ;;  %v906_v49 = vsub.f32 %v527_v17, %v534_v44  ;;  %v384_v12 = vadd.f32 %v383_v8, %v355_v43  ;;  %v101_v17 = vsel %vm98_vm2, %v100_v42, %v93_v10 }
 0x2bb   :  { %v109_v24 = vsel %vm106_vm4, %v108_v47, %v101_v17 }
 0x2bc   :  { %v692_v55 = vpop.eup %691  ;;  %v386_v56 = vmax.f32 %v381_v48, 0.0  ;;  %v539_v57 = vmul.f32 1.442695, %v906_v49  ;;  %v387_v23 = vmax.f32 %v384_v12, 0.0  ;;  %vm183_vm8 = vcmp.eq.s32.totalorder %v109_v24, %v176_v25 }
 0x2bd   :  { %v541_v60 = vmul.f32 %v692_v55, %v652_v51  ;;  %vm185_vm9 = vmand %vm183_vm8, %vm177_vm15  ;;  %vm147_vm15 = vcmp.eq.s32.totalorder %v887_v34, 12 }
 0x2be   :  { %693 = vpow2.f32 %v539_v57  ;;  %v389_v63 = vmul.f32 %v914_v52, %v386_v56  ;;  %v390_v26 = vmul.f32 %v914_v52, %v387_v23  ;;  %v654_v29 = vsel %vm185_vm9, 1.0, %v785_v50 }
 0x2bf   :  { %v543_v1 = vsel %vm528_vm7, %v541_v60, 0.0  ;;  %v555_v30 = vsel %vm528_vm7, %v654_v29, 0.0 }
 0x2c0   :  { %544 = vadd.xlane.f32.xlu0 %v543_v1  ;;  %v391_v3 = vsel %vm220_vm0, %v389_v63, 0.0  ;;  %v394_v28 = vsel %vm220_vm0, %v390_v26, 0.0  ;;  %vm139_vm0 = vcmp.eq.s32.totalorder %v887_v34, 11 }
 0x2c1   :  { %392 = vadd.xlane.f32.xlu2 %v391_v3  ;;  %v142_v35 = vsel %vm139_vm0, %v140_v2, %v134_v33 }
 0x2c2   :  { %v150_v21 = vsel %vm147_vm15, %v148_v5, %v142_v35 }
 0x2c3   :  { %v158_v36 = vsel %vm155_vm13, %v156_v7, %v150_v21 }
 0x2c4   :  { %v694_v15 = vpop.eup %693  ;;  %v166_v37 = vsel %vm163_vm14, %v164_v14, %v158_v36 }
 0x2c5   :  { %v542_v16 = vmul.f32 %v694_v15, %v653_v9  ;;  %v174_v38 = vsel %vm171_vm1, %v172_v20, %v166_v37 }
 0x2c6   :  { %vm184_vm2 = vcmp.eq.s32.totalorder %v174_v38, %v176_v25 }
 0x2c7   :  { %v546_v19 = vsel %vm528_vm7, %v542_v16, 0.0  ;;  %vm186_vm3 = vmand %vm184_vm2, %vm178_vm6  ;;  %vm196_vm6 = vcmp.le.s32.totalorder %v174_v38, 2 }
 0x2c8   :  { %547 = vadd.xlane.f32.xlu0 %v546_v19  ;;  %v655_v39 = vsel %vm186_vm3, 1.0, %v785_v50  ;;  %v657_v0 = vsel %vm196_vm6, 1.0, %v785_v50  ;;  %vm617_vm6 = vcmask 0  }
 0x2c9   :  { %v558_v40 = vsel %vm528_vm7, %v655_v39, 0.0  ;;  %v443_v1 = vadd.f32 1.0, %v657_v0 }
 0x2ca   :  { %559 = vadd.xlane.f32.xlu1 %v558_v40 }
 0x2cb   :  { %v444_v4 = vrot.slane %v443_v1, 4 }
 0x2d0   :  { %395 = vadd.xlane.f32.xlu0 %v394_v28 }
 0x2d8   :  { %556 = vadd.xlane.f32.xlu0 %v555_v30 }
 0x333   :  { %v545_v41 = vpop.xlane.xlu0 %544 }
 0x334   :  { %695 = vlog2.f32 %v545_v41  ;;  %v393_v57 = vpop.xlane.xlu2 %392 }
 0x33a   :  { %v696_v42 = vpop.eup %695 }
 0x33b   :  { %v550_v43 = vmul.f32 0.6931472, %v696_v42  ;;  %v548_v44 = vpop.xlane.xlu0 %547 }
 0x33c   :  { %697 = vlog2.f32 %v548_v44 }
 0x33d   :  { %v553_v45 = vsub.f32 %v872_v27, %v550_v43  ;;  %v397_v27 = vadd.f32 %v393_v57, %v914_v52  ;;  %v560_v8 = vpop.xlane.xlu1 %559 }
 0x33e   :  { %v562_v14 = vmax.f32 %v560_v8, 1.0 }
 0x33f   :  { %v563_v46 = vmul.f32 %v654_v29, %v553_v45  ;;  %v403_v60 = vand.u32 2147483647, %v397_v27  ;;  %v401_v21 = vmax.f32 %v397_v27, 0.0 }
 0x340   :  { %vm591_vm10 = vweird.f32 %v562_v14 }
 0x341   :  { %v565_v47 = vsel %vm528_vm7, %v563_v46, 0.0  ;;  %v405_v62 = vsub.f32 0.0, %v403_v60 }
 0x342   :  { %v698_v48 = vpop.eup %697  ;;  %566 = vadd.xlane.f32.xlu0 %v565_v47 }
 0x343   :  { %v552_v22 = vmul.f32 0.6931472, %v698_v48  ;;  %v396_v54 = vpop.xlane.xlu0 %395  ;;  %v407_v63 = vmul.f32 1.442695, %v405_v62 }
 0x344   :  { %v398_v55 = vadd.f32 %v396_v54, %v914_v52  ;;  %v445_v52 = vadd.f32 %v444_v4, %v443_v1 }
 0x345   :  { %v554_v34 = vsub.f32 %v906_v49, %v552_v22 }
 0x346   :  { %v400_v56 = vmul.f32 -1.0, %v398_v55  ;;  %v446_v12 = vrot.slane %v445_v52, 2  ;;  %v595_v55 = vand.u32 2147483647, %v562_v14 }
 0x347   :  { %v564_v51 = vmul.f32 %v655_v39, %v554_v34 }
 0x348   :  { %v404_v58 = vand.u32 2147483647, %v400_v56  ;;  %v447_v18 = vadd.f32 %v446_v12, %v445_v52  ;;  %v402_v24 = vmax.f32 %v400_v56, 0.0  ;;  %vm596_vm13 = vcmp.eq.f32.partialorder %v595_v55, 8.507059e+37 }
 0x349   :  { %v568_v53 = vsel %vm528_vm7, %v564_v51, 0.0 }
 0x34a   :  { %569 = vadd.xlane.f32.xlu1 %v568_v53  ;;  %v406_v59 = vsub.f32 0.0, %v404_v58  ;;  %v448_v28 = vrot.slane %v447_v18, 1  ;;  %v597_v53 = vand.u32 2147483648, %v562_v14 }
 0x34b   :  { %v557_v7 = vpop.xlane.xlu0 %556 }
 0x34c   :  { %v409_v61 = vmul.f32 1.442695, %v406_v59  ;;  %v561_v10 = vmax.f32 %v557_v7, 1.0  ;;  %v449_v35 = vadd.f32 %v448_v28, %v447_v18  ;;  %v598_v60 = vor.u32 1.1754944e-38, %v597_v53 }
 0x34e   :  { %699 = vpow2.f32 %v409_v61  ;;  %vm576_vm8 = vweird.f32 %v561_v10  ;;  %v580_v47 = vand.u32 2147483647, %v561_v10  ;;  %v582_v48 = vand.u32 2147483648, %v561_v10 }
 0x34f   :  { %701 = vpow2.f32 %v407_v63  ;;  %vm455_vm14 = vweird.f32 %v449_v35  ;;  %v461_v52 = vand.u32 2147483648, %v449_v35 }
 0x350   :  { %v583_v57 = vor.u32 1.1754944e-38, %v582_v48  ;;  %vm581_vm15 = vcmp.eq.f32.partialorder %v580_v47, 8.507059e+37 }
 0x354   :  { %v700_v49 = vpop.eup %699 }
 0x355   :  { %v420_v2 = vadd.f32 1.0, %v700_v49  ;;  %v702_v3 = vpop.eup %701  ;;  %v423_v6 = vmul.f32 -0.5, %v700_v49  ;;  %v426_v13 = vand.u32 2147483647, %v700_v49 }
 0x356   :  { %v411_v5 = vadd.f32 1.0, %v702_v3  ;;  %v414_v15 = vmul.f32 -0.5, %v702_v3  ;;  %v417_v19 = vand.u32 2147483647, %v702_v3 }
 0x357   :  { %703 = vlog2.f32 %v420_v2  ;;  %v424_v11 = vadd.f32 1.0, %v423_v6  ;;  %vm427_vm7 = vcmp.lt.f32.partialorder %v426_v13, 0.0004427343  ;;  %v462_v13 = vor.u32 1.1754944e-38, %v461_v52 }
 0x358   :  { %705 = vlog2.f32 %v411_v5  ;;  %v415_v20 = vadd.f32 1.0, %v414_v15  ;;  %vm418_vm4 = vcmp.lt.f32.partialorder %v417_v19, 0.0004427343 }
 0x359   :  { %707 = vrcp.f32 %v561_v10  ;;  %v425_v16 = vmul.f32 %v700_v49, %v424_v11 }
 0x35a   :  { %709 = vrcp.f32 %v562_v14  ;;  %v416_v30 = vmul.f32 %v702_v3, %v415_v20 }
 0x35b   :  { %711 = vrcp.f32 %v449_v35 }
 0x35d   :  { %v704_v9 = vpop.eup %703 }
 0x35e   :  { %v422_v50 = vmul.f32 0.6931472, %v704_v9  ;;  %v706_v17 = vpop.eup %705 }
 0x35f   :  { %v413_v25 = vmul.f32 0.6931472, %v706_v17  ;;  %v708_v26 = vpop.eup %707 }
 0x360   :  { %v428_v23 = vsel %vm427_vm7, %v425_v16, %v422_v50  ;;  %v710_v31 = vpop.eup %709  ;;  %v572_v33 = vmul.f32 %v708_v26, %v561_v10  ;;  %vm577_vm9 = vweird.f32 %v708_v26  ;;  %v459_v10 = vand.u32 2147483647, %v449_v35 }
 0x361   :  { %v430_v29 = vadd.f32 %v428_v23, %v402_v24  ;;  %v419_v32 = vsel %vm418_vm4, %v416_v30, %v413_v25  ;;  %v587_v37 = vmul.f32 %v710_v31, %v562_v14  ;;  %v712_v46 = vpop.eup %711  ;;  %vm592_vm11 = vweird.f32 %v710_v31  ;;  %vm980_vm12 = vmor %vm576_vm8, %vm577_vm9 }
 0x362   :  { %v429_v38 = vadd.f32 %v419_v32, %v401_v21  ;;  %v573_v39 = vsub.f32 1.0, %v572_v33  ;;  %v451_v56 = vmul.f32 %v712_v46, %v449_v35  ;;  %vm593_vm0 = vmor %vm591_vm10, %vm592_vm11  ;;  %vm456_vm1 = vweird.f32 %v712_v46 }
 0x363   :  { %v432_v36 = vmul.f32 %v657_v0, %v430_v29  ;;  %v588_v41 = vsub.f32 1.0, %v587_v37  ;;  %vm457_vm2 = vmor %vm455_vm14, %vm456_vm1  ;;  %vm460_vm3 = vcmp.eq.f32.partialorder %v459_v10, 8.507059e+37 }
 0x364   :  { %v434_v42 = vsel %vm433_vm5, %v429_v38, 0.0  ;;  %v574_v44 = vmul.f32 %v708_v26, %v573_v39  ;;  %v452_v62 = vsub.f32 1.0, %v451_v56 }
 0x365   :  { %v435_v40 = vsel %vm433_vm5, %v432_v36, 0.0  ;;  %v589_v45 = vmul.f32 %v710_v31, %v588_v41 }
 0x366   :  { %v436_v43 = vadd.f32 %v435_v40, %v434_v42  ;;  %v575_v34 = vadd.f32 %v708_v26, %v574_v44  ;;  %v453_v4 = vmul.f32 %v712_v46, %v452_v62 }
 0x367   :  { %v590_v54 = vadd.f32 %v710_v31, %v589_v45 }
 0x368   :  { %v437_v22 = vrot.slane %v436_v43, 4  ;;  %v579_v27 = vsel %vm980_vm12, %v708_v26, %v575_v34  ;;  %v454_v9 = vadd.f32 %v712_v46, %v453_v4 }
 0x369   :  { %v594_v61 = vsel %vm593_vm0, %v710_v31, %v590_v54  ;;  %v584_v63 = vsel %vm581_vm15, %v583_v57, %v579_v27 }
 0x36a   :  { %v438_v58 = vadd.f32 %v437_v22, %v436_v43  ;;  %v599_v1 = vsel %vm596_vm13, %v598_v60, %v594_v61  ;;  %v458_v15 = vsel %vm457_vm2, %v712_v46, %v454_v9 }
 0x36b   :  { %v463_v17 = vsel %vm460_vm3, %v462_v13, %v458_v15 }
 0x36c   :  { %v439_v0 = vrot.slane %v438_v58, 2 }
 0x36e   :  { %v440_v7 = vadd.f32 %v439_v0, %v438_v58 }
 0x370   :  { %v441_v12 = vrot.slane %v440_v7, 1 }
 0x372   :  { %v442_v16 = vadd.f32 %v441_v12, %v440_v7 }
 0x374   :  { %v464_v20 = vmul.f32 %v463_v17, %v442_v16 }
 0x376   :  { %v611_v25 = vmul.f32 0.5, %v464_v20 }
 0x3b5   :  { %v567_v59 = vpop.xlane.xlu0 %566 }
 0x3b6   :  { %v585_v49 = vmul.f32 %v584_v63, %v567_v59 }
 0x3b8   :  { %v601_v5 = vmul.f32 -1.0, %v585_v49 }
 0x3bd   :  { %v570_v2 = vpop.xlane.xlu1 %569 }
 0x3be   :  { %v600_v3 = vmul.f32 %v599_v1, %v570_v2 }
 0x3c0   :  { %v602_v6 = vmul.f32 -1.0, %v600_v3 }
 0x3c2   :  { %v603_v8 = vadd.f32 %v602_v6, %v601_v5 }
 0x3c4   :  { %v604_v11 = vrot.slane %v603_v8, 4 }
 0x3c6   :  { %v605_v14 = vadd.f32 %v604_v11, %v603_v8 }
 0x3c8   :  { %v606_v50 = vrot.slane %v605_v14, 2 }
 0x3ca   :  { %v607_v18 = vadd.f32 %v606_v50, %v605_v14 }
 0x3cc   :  { %v608_v23 = vrot.slane %v607_v18, 1 }
 0x3ce   :  { %v609_v19 = vadd.f32 %v608_v23, %v607_v18 }
 0x3d0   :  { %v610_v24 = vmul.f32 0.0625, %v609_v19 }
 0x3d2   :  { %v612_v26 = vadd.f32 %v611_v25, %v610_v24 }
 0x3d4   :  { %614 = vrot.lane.b32.xlu0 %v612_v26, %s786_s15 }
 0x446   :  { %v615_v28 = vpop.permute.xlu0 %614 }
 0x447   :  { %618 = vst.msk [vmem:[#allocation7] sm:$0x1] %vm617_vm6, %v615_v28 }
 0x448   :  { %629 = dma.vmem_to_hbm [thread:$0]  %s625_s17, 16, %s627_s20, [#allocation4]  }
 0x449   :  { %777 = dma.done.wait [#allocation4], 16  }
 0x44a   :  { %778 = vsyncadd [#allocation4], 4294967280 }
 0x44b   :  { %634 = vsyncpa [#allocation3], 1 }
 0x44c   :  { %635 = vsyncpa [#allocation4], 1 }
 0x44d   :  { %636 = vsyncpa [#allocation5], 1 }

</bundles_post_ra>
